<compile_context>
chip_gen: v6e
topology: v6e:2x2x1
jax: 0.10.0
libtpu: 0.0.40
codegen_flags: <defaults>
</compile_context>

<pallas_src>
import jax
import jax.numpy as jnp
from jax.experimental import pallas as pl
from jax.experimental.pallas import tpu as pltpu


# ----------------------------------------------------------------------------
# Pallas kernel: 4 MXU matmuls (bf16 operands, f32 accumulate) + f32 bias adds
# and ReLUs on the VPU.  One grid step processes one batch tile; the ensemble
# mean is folded into the last weight/bias slab.
# ----------------------------------------------------------------------------
def ensemble_kernel(x_ref, w1_ref, w2_ref, w3_ref, w4_ref,
                    b1_ref, b2_ref, b3_ref, b4_ref, o_ref):
    h = x_ref[...]                                                      # (TB, D_in) f32
    h = jnp.dot(h.astype(jnp.bfloat16), w1_ref[...],
                preferred_element_type=jnp.float32) + b1_ref[...]       # (TB, K1)
    h = jnp.maximum(h, 0.0)
    h = jnp.dot(h.astype(jnp.bfloat16), w2_ref[...],
                preferred_element_type=jnp.float32) + b2_ref[...]       # (TB, K2)
    h = jnp.maximum(h, 0.0)
    h = jnp.dot(h.astype(jnp.bfloat16), w3_ref[...],
                preferred_element_type=jnp.float32) + b3_ref[...]       # (TB, K3)
    h = jnp.maximum(h, 0.0)
    o_ref[...] = jnp.dot(h.astype(jnp.bfloat16), w4_ref[...],
                         preferred_element_type=jnp.float32) + b4_ref[...]  # (TB, K4)


def _round_up(n, m):
    return ((n + m - 1) // m) * m


def ensemble_forward(x, fused, *, batch_tile=512):
    """x: (B, D_in).  fused: lane-fused, BN-folded bf16 weight slabs + f32 biases."""
    x = x.astype(jnp.float32)
    B, D_in = x.shape
    C = fused["num_classes"]
    K1 = fused["W1"].shape[1]
    K2 = fused["W2"].shape[1]
    K3 = fused["W3"].shape[1]
    K4 = fused["W4"].shape[1]

    # Batch tiling: whole batch in one step when small; grid-parallel tiles when large.
    TB = min(batch_tile, _round_up(B, 8))
    Bp = _round_up(B, TB)
    if Bp != B:
        x = jnp.pad(x, ((0, Bp - B), (0, 0)))

    flops = 2 * Bp * (D_in * K1 + K1 * K2 + K2 * K3 + K3 * K4)
    bytes_accessed = (
        Bp * D_in * 4 + Bp * K4 * 4
        + 2 * sum(int(fused[k].size) for k in ("W1", "W2", "W3", "W4"))
        + 4 * sum(int(fused[k].size) for k in ("b1", "b2", "b3", "b4"))
    )

    def rep(arr):  # grid-invariant (replicated) 2-D block
        return pl.BlockSpec(arr.shape, lambda i: (0, 0))

    out = pl.pallas_call(
        ensemble_kernel,
        out_shape=jax.ShapeDtypeStruct((Bp, K4), jnp.float32),
        grid_spec=pltpu.PrefetchScalarGridSpec(
            num_scalar_prefetch=0,
            grid=(Bp // TB,),
            in_specs=[
                pl.BlockSpec((TB, D_in), lambda i: (i, 0)),
                rep(fused["W1"]), rep(fused["W2"]), rep(fused["W3"]), rep(fused["W4"]),
                rep(fused["b1"]), rep(fused["b2"]), rep(fused["b3"]), rep(fused["b4"]),
            ],
            out_specs=pl.BlockSpec((TB, K4), lambda i: (i, 0)),
        ),
        compiler_params=pltpu.CompilerParams(
            dimension_semantics=("parallel",)),
        cost_estimate=pl.CostEstimate(
            flops=flops, transcendentals=0, bytes_accessed=bytes_accessed),
    )(x, fused["W1"], fused["W2"], fused["W3"], fused["W4"],
      fused["b1"], fused["b2"], fused["b3"], fused["b4"])
    return out[:B, :C]


# ----------------------------------------------------------------------------
# Parameter construction (synthetic, deterministic).  BN folded at build time;
# fuse_params builds the lane-fused / lane-padded bf16 slabs + f32 bias rows.
# ----------------------------------------------------------------------------
def make_params(key, input_size, num_classes, num_models=3, hidden_size=128):
    dims = [input_size, hidden_size * 2, hidden_size, hidden_size // 2, num_classes]
    eps = 1e-5
    keys = jax.random.split(key, num_models * 4 * 6).reshape(num_models, 4, 6, 2)
    params = {"dims": dims, "num_models": num_models}

    for li in range(4):
        din, dout = dims[li], dims[li + 1]
        has_bn = li < 3
        Ws, bs = [], []
        for mi in range(num_models):
            kw, kb, kg, kbeta, kmu, kvar = keys[mi, li]
            bound = 1.0 / jnp.sqrt(jnp.float32(din))
            W = jax.random.uniform(kw, (din, dout), jnp.float32, -bound, bound)
            b = jax.random.uniform(kb, (dout,), jnp.float32, -bound, bound)
            if has_bn:
                gamma = jax.random.uniform(kg, (dout,), jnp.float32, 0.5, 1.5)
                beta = jax.random.uniform(kbeta, (dout,), jnp.float32, -0.5, 0.5)
                mu = jax.random.uniform(kmu, (dout,), jnp.float32, -0.5, 0.5)
                var = jax.random.uniform(kvar, (dout,), jnp.float32, 0.5, 1.5)
                s = gamma / jnp.sqrt(var + eps)          # exact eval-mode BN fold
                t = beta - mu * s
                W = W * s[None, :]
                b = b * s + t
            Ws.append(W)
            bs.append(b)
        params[f"w{li + 1}"] = jnp.stack(Ws, 0)          # (M, din, dout)
        params[f"b{li + 1}"] = jnp.stack(bs, 0)          # (M, dout)
    return params


def fuse_params(params, lane=128):
    """Build lane-fused, zero-padded weight slabs (bf16) + bias rows (f32), host-side."""
    M = params["num_models"]
    D_in, H1, H2, H3, C = params["dims"]

    K1 = _round_up(M * H1, lane)
    K2 = _round_up(M * H2, lane)
    K3 = _round_up(M * H3, lane)
    K4 = _round_up(C, lane)

    # Layer 1: models concatenated along the lane axis.
    W1 = jnp.zeros((D_in, K1), jnp.float32)
    b1 = jnp.zeros((1, K1), jnp.float32)
    for mi in range(M):
        W1 = W1.at[:, mi * H1:(mi + 1) * H1].set(params["w1"][mi])
        b1 = b1.at[0, mi * H1:(mi + 1) * H1].set(params["b1"][mi])

    def block_diag(w, b, din, dout, K_in, K_out):
        A = jnp.zeros((K_in, K_out), jnp.float32)
        v = jnp.zeros((1, K_out), jnp.float32)
        for mi in range(M):
            A = A.at[mi * din:(mi + 1) * din, mi * dout:(mi + 1) * dout].set(w[mi])
            v = v.at[0, mi * dout:(mi + 1) * dout].set(b[mi])
        return A, v

    W2, b2 = block_diag(params["w2"], params["b2"], H1, H2, K1, K2)
    W3, b3 = block_diag(params["w3"], params["b3"], H2, H3, K2, K3)

    # Layer 4: all models map onto the same output columns scaled by 1/M, so the
    # final matmul + bias computes the ensemble mean directly; lane-padded to 128.
    W4 = jnp.zeros((K3, K4), jnp.float32)
    b4 = jnp.zeros((1, K4), jnp.float32)
    for mi in range(M):
        W4 = W4.at[mi * H3:(mi + 1) * H3, :C].set(params["w4"][mi] / M)
    b4 = b4.at[0, :C].set(jnp.sum(params["b4"], axis=0) / M)

    return {
        "W1": W1.astype(jnp.bfloat16), "W2": W2.astype(jnp.bfloat16),
        "W3": W3.astype(jnp.bfloat16), "W4": W4.astype(jnp.bfloat16),
        "b1": b1, "b2": b2, "b3": b3, "b4": b4,
        "num_classes": C,
    }


def reference_forward(x, params):
    """Pure-JAX per-model f32 reference for correctness checking."""
    M = params["num_models"]
    outs = []
    for mi in range(M):
        h = x
        for li in range(1, 5):
            h = h @ params[f"w{li}"][mi] + params[f"b{li}"][mi][None, :]
            if li < 4:
                h = jnp.maximum(h, 0.0)
        outs.append(h)
    return jnp.mean(jnp.stack(outs, 0), axis=0)


if __name__ == "__main__":
    # Small shapes consistent with the module's forward.
    batch = 8
    input_size = 32
    num_classes = 8
    hidden_size = 32
    num_models = 3

    key = jax.random.PRNGKey(0)
    kx, kp = jax.random.split(key)
    x = jax.random.normal(kx, (batch, input_size), jnp.float32)
    params = make_params(kp, input_size, num_classes, num_models, hidden_size)
    fused = fuse_params(params)

    # Small-batch path (grid=(1,), everything VMEM-resident in one step).
    out = jax.block_until_ready(ensemble_forward(x, fused))
    ref = reference_forward(x, params)
    assert out.shape == (batch, num_classes), out.shape
    # bf16 MXU operands -> loosened tolerance vs. the f32 reference.
    err = float(jnp.max(jnp.abs(out - ref)))
    assert jnp.allclose(out, ref, atol=3e-2, rtol=3e-2), err

    # Larger-batch path: exercises the parallel batch grid + ragged padding.
    x_big = jax.random.normal(jax.random.PRNGKey(1), (200, input_size), jnp.float32)
    out_big = jax.block_until_ready(ensemble_forward(x_big, fused, batch_tile=64))
    ref_big = reference_forward(x_big, params)
    assert out_big.shape == (200, num_classes), out_big.shape
    err_big = float(jnp.max(jnp.abs(out_big - ref_big)))
    assert jnp.allclose(out_big, ref_big, atol=3e-2, rtol=3e-2), err_big

    # TODO(synk): training-mode BatchNorm (batch statistics) and active Dropout
    # are not implemented; this kernel reproduces eval/inference semantics.
    print("KERNEL_OK")
</pallas_src>

<mosaic_0001>
module attributes {stable_mosaic.version = 11 : i64} {
  func.func @ensemble_kernel(%arg0: i32, %arg1: memref<8x32xf32, #tpu.memory_space<vmem>>, %arg2: memref<32x256xbf16, #tpu.memory_space<vmem>>, %arg3: memref<256x128xbf16, #tpu.memory_space<vmem>>, %arg4: memref<128x128xbf16, #tpu.memory_space<vmem>>, %arg5: memref<128x128xbf16, #tpu.memory_space<vmem>>, %arg6: memref<1x256xf32, #tpu.memory_space<vmem>>, %arg7: memref<1x128xf32, #tpu.memory_space<vmem>>, %arg8: memref<1x128xf32, #tpu.memory_space<vmem>>, %arg9: memref<1x128xf32, #tpu.memory_space<vmem>>, %arg10: memref<8x128xf32, #tpu.memory_space<vmem>>) attributes {dimension_semantics = [#tpu.dimension_semantics<parallel>], iteration_bounds = array<i64: 1>, scalar_prefetch = 0 : i64, scratch_operands = 0 : i64, tpu.core_type = #tpu.core_type<tc>, window_params = [{transform_indices = @transform_0, window_bounds = array<i64: 8, 32>}, {pipeline_mode = #tpu.pipeline_mode<synchronous>, transform_indices = @transform_1, window_bounds = array<i64: 32, 256>}, {pipeline_mode = #tpu.pipeline_mode<synchronous>, transform_indices = @transform_2, window_bounds = array<i64: 256, 128>}, {pipeline_mode = #tpu.pipeline_mode<synchronous>, transform_indices = @transform_3, window_bounds = array<i64: 128, 128>}, {pipeline_mode = #tpu.pipeline_mode<synchronous>, transform_indices = @transform_4, window_bounds = array<i64: 128, 128>}, {pipeline_mode = #tpu.pipeline_mode<synchronous>, transform_indices = @transform_5, window_bounds = array<i64: 1, 256>}, {pipeline_mode = #tpu.pipeline_mode<synchronous>, transform_indices = @transform_6, window_bounds = array<i64: 1, 128>}, {pipeline_mode = #tpu.pipeline_mode<synchronous>, transform_indices = @transform_7, window_bounds = array<i64: 1, 128>}, {pipeline_mode = #tpu.pipeline_mode<synchronous>, transform_indices = @transform_8, window_bounds = array<i64: 1, 128>}, {transform_indices = @transform_9, window_bounds = array<i64: 8, 128>}]} {
    %c0 = arith.constant 0 : index
    %c0_0 = arith.constant 0 : index
    %0 = vector.load %arg1[%c0, %c0_0] : memref<8x32xf32, #tpu.memory_space<vmem>>, vector<8x32xf32>
    %1 = arith.truncf %0 : vector<8x32xf32> to vector<8x32xbf16>
    %c0_1 = arith.constant 0 : index
    %c0_2 = arith.constant 0 : index
    %2 = vector.load %arg2[%c0_1, %c0_2] : memref<32x256xbf16, #tpu.memory_space<vmem>>, vector<32x256xbf16>
    %cst = arith.constant dense<0.000000e+00> : vector<8x256xf32>
    %3 = tpu.matmul %1, %2, %cst {dimension_numbers = #tpu.dot_dimension_numbers<[1], [0], [0], [1], [0, 0, 1, 1], [], []>} : vector<8x32xbf16>, vector<32x256xbf16>, vector<8x256xf32> -> vector<8x256xf32>
    %c0_3 = arith.constant 0 : index
    %c0_4 = arith.constant 0 : index
    %4 = vector.load %arg6[%c0_3, %c0_4] : memref<1x256xf32, #tpu.memory_space<vmem>>, vector<1x256xf32>
    %5 = vector.broadcast %4 : vector<1x256xf32> to vector<8x256xf32>
    %6 = arith.addf %3, %5 : vector<8x256xf32>
    %cst_5 = arith.constant 0.000000e+00 : f32
    %7 = vector.broadcast %cst_5 : f32 to vector<8x256xf32>
    %8 = arith.maximumf %6, %7 : vector<8x256xf32>
    %9 = arith.truncf %8 : vector<8x256xf32> to vector<8x256xbf16>
    %c0_6 = arith.constant 0 : index
    %c0_7 = arith.constant 0 : index
    %10 = vector.load %arg3[%c0_6, %c0_7] : memref<256x128xbf16, #tpu.memory_space<vmem>>, vector<256x128xbf16>
    %cst_8 = arith.constant dense<0.000000e+00> : vector<8x128xf32>
    %11 = tpu.matmul %9, %10, %cst_8 {dimension_numbers = #tpu.dot_dimension_numbers<[1], [0], [0], [1], [0, 0, 1, 1], [], []>} : vector<8x256xbf16>, vector<256x128xbf16>, vector<8x128xf32> -> vector<8x128xf32>
    %c0_9 = arith.constant 0 : index
    %c0_10 = arith.constant 0 : index
    %12 = vector.load %arg7[%c0_9, %c0_10] : memref<1x128xf32, #tpu.memory_space<vmem>>, vector<1x128xf32>
    %13 = vector.broadcast %12 : vector<1x128xf32> to vector<8x128xf32>
    %14 = arith.addf %11, %13 : vector<8x128xf32>
    %cst_11 = arith.constant 0.000000e+00 : f32
    %15 = vector.broadcast %cst_11 : f32 to vector<8x128xf32>
    %16 = arith.maximumf %14, %15 : vector<8x128xf32>
    %17 = arith.truncf %16 : vector<8x128xf32> to vector<8x128xbf16>
    %c0_12 = arith.constant 0 : index
    %c0_13 = arith.constant 0 : index
    %18 = vector.load %arg4[%c0_12, %c0_13] : memref<128x128xbf16, #tpu.memory_space<vmem>>, vector<128x128xbf16>
    %cst_14 = arith.constant dense<0.000000e+00> : vector<8x128xf32>
    %19 = tpu.matmul %17, %18, %cst_14 {dimension_numbers = #tpu.dot_dimension_numbers<[1], [0], [0], [1], [0, 0, 1, 1], [], []>} : vector<8x128xbf16>, vector<128x128xbf16>, vector<8x128xf32> -> vector<8x128xf32>
    %c0_15 = arith.constant 0 : index
    %c0_16 = arith.constant 0 : index
    %20 = vector.load %arg8[%c0_15, %c0_16] : memref<1x128xf32, #tpu.memory_space<vmem>>, vector<1x128xf32>
    %21 = vector.broadcast %20 : vector<1x128xf32> to vector<8x128xf32>
    %22 = arith.addf %19, %21 : vector<8x128xf32>
    %cst_17 = arith.constant 0.000000e+00 : f32
    %23 = vector.broadcast %cst_17 : f32 to vector<8x128xf32>
    %24 = arith.maximumf %22, %23 : vector<8x128xf32>
    %25 = arith.truncf %24 : vector<8x128xf32> to vector<8x128xbf16>
    %c0_18 = arith.constant 0 : index
    %c0_19 = arith.constant 0 : index
    %26 = vector.load %arg5[%c0_18, %c0_19] : memref<128x128xbf16, #tpu.memory_space<vmem>>, vector<128x128xbf16>
    %cst_20 = arith.constant dense<0.000000e+00> : vector<8x128xf32>
    %27 = tpu.matmul %25, %26, %cst_20 {dimension_numbers = #tpu.dot_dimension_numbers<[1], [0], [0], [1], [0, 0, 1, 1], [], []>} : vector<8x128xbf16>, vector<128x128xbf16>, vector<8x128xf32> -> vector<8x128xf32>
    %c0_21 = arith.constant 0 : index
    %c0_22 = arith.constant 0 : index
    %28 = vector.load %arg9[%c0_21, %c0_22] : memref<1x128xf32, #tpu.memory_space<vmem>>, vector<1x128xf32>
    %29 = vector.broadcast %28 : vector<1x128xf32> to vector<8x128xf32>
    %30 = arith.addf %27, %29 : vector<8x128xf32>
    %c0_23 = arith.constant 0 : index
    %c0_24 = arith.constant 0 : index
    %31 = vector.load %arg10[%c0_23, %c0_24] : memref<8x128xf32, #tpu.memory_space<vmem>>, vector<8x128xf32>
    tpu.vector_store %arg10[%c0_23, %c0_24], %30 {strides = array<i32>} : memref<8x128xf32, #tpu.memory_space<vmem>>, vector<8x128xf32>,
    return
  }
  func.func @transform_0(%arg0: i32) -> (i32, i32) {
    %c0_i32 = arith.constant 0 : i32
    %c0_i32_0 = arith.constant 0 : i32
    return %arg0, %c0_i32 : i32, i32
  }
  func.func @transform_1(%arg0: i32) -> (i32, i32) {
    %c0_i32 = arith.constant 0 : i32
    %c0_i32_0 = arith.constant 0 : i32
    %c0_i32_1 = arith.constant 0 : i32
    return %c0_i32, %c0_i32_0 : i32, i32
  }
  func.func @transform_2(%arg0: i32) -> (i32, i32) {
    %c0_i32 = arith.constant 0 : i32
    %c0_i32_0 = arith.constant 0 : i32
    %c0_i32_1 = arith.constant 0 : i32
    return %c0_i32, %c0_i32_0 : i32, i32
  }
  func.func @transform_3(%arg0: i32) -> (i32, i32) {
    %c0_i32 = arith.constant 0 : i32
    %c0_i32_0 = arith.constant 0 : i32
    %c0_i32_1 = arith.constant 0 : i32
    return %c0_i32, %c0_i32_0 : i32, i32
  }
  func.func @transform_4(%arg0: i32) -> (i32, i32) {
    %c0_i32 = arith.constant 0 : i32
    %c0_i32_0 = arith.constant 0 : i32
    %c0_i32_1 = arith.constant 0 : i32
    return %c0_i32, %c0_i32_0 : i32, i32
  }
  func.func @transform_5(%arg0: i32) -> (i32, i32) {
    %c0_i32 = arith.constant 0 : i32
    %c0_i32_0 = arith.constant 0 : i32
    %c0_i32_1 = arith.constant 0 : i32
    return %c0_i32, %c0_i32_0 : i32, i32
  }
  func.func @transform_6(%arg0: i32) -> (i32, i32) {
    %c0_i32 = arith.constant 0 : i32
    %c0_i32_0 = arith.constant 0 : i32
    %c0_i32_1 = arith.constant 0 : i32
    return %c0_i32, %c0_i32_0 : i32, i32
  }
  func.func @transform_7(%arg0: i32) -> (i32, i32) {
    %c0_i32 = arith.constant 0 : i32
    %c0_i32_0 = arith.constant 0 : i32
    %c0_i32_1 = arith.constant 0 : i32
    return %c0_i32, %c0_i32_0 : i32, i32
  }
  func.func @transform_8(%arg0: i32) -> (i32, i32) {
    %c0_i32 = arith.constant 0 : i32
    %c0_i32_0 = arith.constant 0 : i32
    %c0_i32_1 = arith.constant 0 : i32
    return %c0_i32, %c0_i32_0 : i32, i32
  }
  func.func @transform_9(%arg0: i32) -> (i32, i32) {
    %c0_i32 = arith.constant 0 : i32
    %c0_i32_0 = arith.constant 0 : i32
    return %arg0, %c0_i32 : i32, i32
  }
}

</mosaic_0001>

<bundles_post_ra>
// kernel: tpu_custom_call.1
= control target key start
LH: loop header
LB: loop body
LE: loop exit
PB: predicated region body
PF: predicated region fallthrough
CT: control target
= control target key end

     0   :  { %14 = vsyncpa [#allocation3], 0  ;;  %s1025_s0 = inlined_call_operand.hbm [shape: f32[8,32], index: 0, kind: input, shape index: {}]   ;;  %s1026_s1 = inlined_call_operand.hbm [shape: bf16[32,256], index: 1, kind: input, shape index: {}]   ;;  %s1027_s2 = inlined_call_operand.hbm [shape: bf16[256,128], index: 2, kind: input, shape index: {}]   ;;  %s1028_s3 = inlined_call_operand.hbm [shape: bf16[128,128], index: 3, kind: input, shape index: {}]   ;;  %s1029_s4 = inlined_call_operand.hbm [shape: bf16[128,128], index: 4, kind: input, shape index: {}]   ;;  %s1030_s5 = inlined_call_operand.vmem [shape: f32[1,256], index: 5, kind: input, shape index: {}]   ;;  %s1031_s6 = inlined_call_operand.vmem [shape: f32[1,128], index: 6, kind: input, shape index: {}]   ;;  %s1032_s7 = inlined_call_operand.vmem [shape: f32[1,128], index: 7, kind: input, shape index: {}]   ;;  %s1033_s8 = inlined_call_operand.vmem [shape: f32[1,128], index: 8, kind: input, shape index: {}]   ;;  %s1034_s9 = inlined_call_operand.hbm [shape: f32[8,128], index: 9, kind: output, shape index: {}]  }
   0x1   :  { %15 = vsyncpa [#allocation6], 0 }
   0x2   :  { %16 = vsyncpa [#allocation9], 0 }
   0x3   :  { %17 = vsyncpa [#allocation4], 0  ;;  %s905_s30 = smov [#allocation5]  }
   0x4   :  { %s33_s10 = sshll.u32 %s905_s30, 4  ;;  %s34_s10 = int_to_ptr.vmem [resolvable:$true] %s33_s10 }
   0x5   :  { %s785_s11 = scalar_lea.vmem %s34_s10, 512  ;;  %p790_p1 = scmp.lt.s32.totalorder %s34_s10, %s34_s10 }
   0x6   :  { %p786_p0 = scmp.ne.s32.totalorder %s34_s10, %s785_s11  ;;  %p791_p2 = scmp.lt.s32.totalorder %s785_s11, %s785_s11 }
   0x8   :  { %p792_p3 = por %p791_p2, %p790_p1 }
   0xa   :  { %p793_p4 = pnand %p792_p3, %p786_p0 }
   0xc   :  { %796 = shalt.err (!%p793_p4)
}
   0xd   :  { %s906_s12 = smov 128   ;;  %s907_s13 = smov 8  }
   0xe   :  { %39 = dma.hbm_to_vmem [thread:$0]  %s1026_s1, 512, %s34_s10, [#allocation6], %s906_s12, %s906_s12, %s907_s13  }
   0xf   :  { %s908_s16 = smov [#allocation8]   ;;  %s909_s18 = smov [#allocation2]  }
  0x10   :  { %s57_s17 = sshll.u32 %s908_s16, 4  ;;  %s24_s19 = sshll.u32 %s909_s18, 4  ;;  %s58_s17 = int_to_ptr.vmem [resolvable:$true] %s57_s17  ;;  %s25_s19 = int_to_ptr.vmem [resolvable:$true] %s24_s19 }
  0x11   :  { %s805_s20 = scalar_lea.vmem %s58_s17, 1024  ;;  %p810_p6 = scmp.lt.s32.totalorder %s58_s17, %s58_s17 }
  0x12   :  { %p806_p5 = scmp.ne.s32.totalorder %s58_s17, %s805_s20  ;;  %p811_p7 = scmp.lt.s32.totalorder %s805_s20, %s805_s20 }
  0x14   :  { %p812_p8 = por %p811_p7, %p810_p6 }
  0x16   :  { %p813_p9 = pnand %p812_p8, %p806_p5 }
  0x18   :  { %816 = shalt.err (!%p813_p9)
}
  0x19   :  { %s910_s21 = smov 64   ;;  %s911_s22 = smov 4  }
  0x1a   :  { %63 = dma.hbm_to_vmem [thread:$0]  %s1028_s3, 1024, %s58_s17, [#allocation9], %s910_s21, %s910_s21, %s911_s22  }
  0x1b   :  { %s825_s1 = scalar_lea.vmem %s25_s19, 128  ;;  %p830_p11 = scmp.lt.s32.totalorder %s25_s19, %s25_s19 }
  0x1c   :  { %p826_p10 = scmp.ne.s32.totalorder %s25_s19, %s825_s1  ;;  %p831_p12 = scmp.lt.s32.totalorder %s825_s1, %s825_s1 }
  0x1e   :  { %p832_p13 = por %p831_p12, %p830_p11 }
  0x20   :  { %p833_p0 = pnand %p832_p13, %p826_p10 }
  0x22   :  { %836 = shalt.err (!%p833_p0)
}
  0x23   :  { %27 = dma.hbm_to_vmem [thread:$0]  %s1025_s0, 128, %s25_s19, [#allocation3]  }
  0x24   :  { %s912_s27 = smov [#allocation7]   ;;  %s913_s29 = smov [#allocation10]  }
  0x25   :  { %s45_s28 = sshll.u32 %s912_s27, 4  ;;  %s69_s30 = sshll.u32 %s913_s29, 4  ;;  %s46_s28 = int_to_ptr.vmem [resolvable:$true] %s45_s28  ;;  %s70_s30 = int_to_ptr.vmem [resolvable:$true] %s69_s30 }
  0x26   :  { %s845_s10 = scalar_lea.vmem %s46_s28, 2048  ;;  %p850_p2 = scmp.lt.s32.totalorder %s46_s28, %s46_s28 }
  0x27   :  { %p846_p1 = scmp.ne.s32.totalorder %s46_s28, %s845_s10  ;;  %p851_p3 = scmp.lt.s32.totalorder %s845_s10, %s845_s10 }
  0x29   :  { %p852_p4 = por %p851_p3, %p850_p2 }
  0x2b   :  { %p853_p5 = pnand %p852_p4, %p846_p1 }
  0x2d   :  { %856 = shalt.err (!%p853_p5)
}
  0x2e   :  { %51 = dma.hbm_to_vmem [thread:$0]  %s1027_s2, 2048, %s46_s28, [#allocation6], %s910_s21, %s910_s21, %s911_s22  }
  0x2f   :  { %s865_s0 = scalar_lea.vmem %s70_s30, 1024  ;;  %p870_p7 = scmp.lt.s32.totalorder %s70_s30, %s70_s30 }
  0x30   :  { %p866_p6 = scmp.ne.s32.totalorder %s70_s30, %s865_s0  ;;  %p871_p8 = scmp.lt.s32.totalorder %s865_s0, %s865_s0 }
  0x32   :  { %p872_p9 = por %p871_p8, %p870_p7 }
  0x34   :  { %p873_p10 = pnand %p872_p9, %p866_p6 }
  0x36   :  { %876 = shalt.err (!%p873_p10)
}
  0x37   :  { %75 = dma.hbm_to_vmem [thread:$0]  %s1029_s4, 1024, %s70_s30, [#allocation9], %s910_s21, %s910_s21, %s911_s22  }
  0x38   :  { %897 = dma.done.wait [#allocation3], 128  }
  0x39   :  { %898 = vsyncadd [#allocation3], 4294967168 }
  0x3a   :  { %899 = dma.done.wait [#allocation6], 2560  }
  0x3b   :  { %900 = vsyncadd [#allocation6], 4294964736 }
  0x3c   :  { %901 = dma.done.wait [#allocation9], 2048  }
  0x3d   :  { %902 = vsyncadd [#allocation9], 4294965248  ;;  %v914_v0 = vmov 0   ;;  %v739_v1 = vld [vmem:[#allocation5 + $0x14] ss:$8 sps:$4 sm:$0xff]   ;;  %vm138_vm0 = vcmask 261120   ;;  %v108_v29 = vlaneseq }
  0x3e   :  { %174 = vmatprep.mubr.bf16.mxu0 %v914_v0  ;;  %v741_v2 = vld [vmem:[#allocation5 + $0x10] ss:$8 sps:$4 sm:$0xff]   ;;  %154 = vmatprep.subr.bf16.mxu0 %v739_v1  ;;  %v742_v3 = vld [vmem:[#allocation5 + $0x4] ss:$8 sps:$4 sm:$0xff]   ;;  %v744_v4 = vld [vmem:[#allocation5] ss:$8 sps:$4 sm:$0xff]  }
  0x3f   :  { %v100_v5 = vld [vmem:[#allocation2] sm:$0xff]  ;;  %155 = vmatpush1.bf16.msra.mxu0 %v741_v2  ;;  %v747_v8 = vld [vmem:[#allocation7 + $0x70] sm:$0xff]   ;;  %v749_v11 = vld [vmem:[#allocation7 + $0x68] sm:$0xff]   ;;  %v915_v24 = vmov 0.0   ;;  %v109_v30 = vshrl.u32 %v108_v29, 7  ;;  %vm916_vm1 = vmmov 0  }
  0x40   :  { %v745_v6 = vld [vmem:[#allocation7 + $0x78] sm:$0xff]   ;;  %156 = vmatprep.subr.bf16.mxu0 %v742_v3  ;;  %v101_v9 = vpack.c.bf16 %v100_v5, %v100_v5  ;;  %v748_v10 = vld [vmem:[#allocation7 + $0x30] sm:$0xff]   ;;  %v750_v12 = vld [vmem:[#allocation7 + $0x28] sm:$0xff]   ;;  %s917_s18 = smov [#allocation11]  }
  0x41   :  { %v746_v7 = vld [vmem:[#allocation7 + $0x38] sm:$0xff]   ;;  %646 = vmatprep.subr.bf16.mxu1 %v745_v6  ;;  %v751_v13 = vld [vmem:[#allocation7 + $0x60] sm:$0xff]   ;;  %v755_v17 = vld [vmem:[#allocation7 + $0x50] sm:$0xff]   ;;  %v110_v31 = vsub.s32 0, %v109_v30  ;;  %v114_v33 = vsub.s32 1, %v109_v30  ;;  %s595_s19 = sshll.u32 %s917_s18, 4  ;;  %s596_s19 = int_to_ptr.vmem [resolvable:$true] %s595_s19 }
  0x42   :  { %647 = vmatpush3.bf16.msra.mxu1 %v746_v7  ;;  %v752_v14 = vld [vmem:[#allocation7 + $0x20] sm:$0xff]   ;;  %v753_v15 = vld [vmem:[#allocation7 + $0x58] sm:$0xff]   ;;  %v756_v18 = vld [vmem:[#allocation7 + $0x10] sm:$0xff]   ;;  %p882_p12 = scmp.lt.s32.totalorder %s596_s19, %s596_s19 }
  0x43   :  { %157 = vmatpush1.bf16.msra.mxu0 %v744_v4  ;;  %648 = vmatprep.subr.bf16.mxu1 %v747_v8  ;;  %v754_v16 = vld [vmem:[#allocation7 + $0x18] sm:$0xff]   ;;  %v757_v19 = vld [vmem:[#allocation7 + $0x48] sm:$0xff]   ;;  %v759_v21 = vld [vmem:[#allocation7 + $0x40] sm:$0xff]  }
  0x44   :  { %v758_v20 = vld [vmem:[#allocation7 + $0x8] sm:$0xff]   ;;  %v760_v22 = vld [vmem:[#allocation7] sm:$0xff]   ;;  %v761_v23 = vld [vmem:[#allocation8 + $0x38] sm:$0xff]   ;;  %686 = vmatprep.subr.bf16.mxu0 %v915_v24 }
  0x45   :  { %v762_v25 = vld [vmem:[#allocation8 + $0x30] sm:$0xff]   ;;  %v763_v26 = vld [vmem:[#allocation8 + $0x28] sm:$0xff]   ;;  %v764_v27 = vld [vmem:[#allocation8 + $0x20] sm:$0xff]  }
  0x46   :  { %610 = vmatmul.mubr.msk.bf16.vlgmr.msra.gmra.mxu0 %vm138_vm0, %v101_v9  ;;  %649 = vmatpush3.bf16.msra.mxu1 %v748_v10  ;;  %v765_v28 = vld [vmem:[#allocation8 + $0x18] sm:$0xff]   ;;  %v766_v46 = vld [vmem:[#allocation8 + $0x10] sm:$0xff]   ;;  %v767_v47 = vld [vmem:[#allocation8 + $0x8] sm:$0xff]  }
  0x47   :  { %650 = vmatprep.subr.bf16.mxu1 %v749_v11  ;;  %687 = vmatpush3.bf16.msra.mxu0 %v761_v23  ;;  %v106_v32 = vld [vmem:[%s1030_s5] sm:$0x3]  ;;  %v768_v48 = vld [vmem:[#allocation8] sm:$0xff]   ;;  %v770_v50 = vld [vmem:[#allocation10 + $0x30] sm:$0xff]  }
  0x48   :  { %688 = vmatprep.subr.bf16.mxu0 %v915_v24  ;;  %v111_v34 = vrot.slane %v106_v32, %v110_v31  ;;  %v115_v35 = vrot.slane %v106_v32, %v114_v33  ;;  %702 = vmatprep.mubr.msk.bf16.mxu0 %vm916_vm1, %v915_v24  ;;  %v769_v49 = vld [vmem:[#allocation10 + $0x38] sm:$0xff]   ;;  %v771_v51 = vld [vmem:[#allocation10 + $0x28] sm:$0xff]   ;;  %v772_v52 = vld [vmem:[#allocation10 + $0x20] sm:$0xff]  }
  0x49   :  { %v773_v53 = vld [vmem:[#allocation10 + $0x18] sm:$0xff]   ;;  %v774_v54 = vld [vmem:[#allocation10 + $0x10] sm:$0xff]   ;;  %v775_v0 = vld [vmem:[#allocation10 + $0x8] sm:$0xff]  }
  0x4a   :  { %651 = vmatpush3.bf16.msra.mxu1 %v750_v12  ;;  %v611_v56 = vld [vmem:[%s1031_s6] ss:$0 sm:$0xff]  ;;  %v776_v1 = vld [vmem:[#allocation10] sm:$0xff]  }
  0x4b   :  { %652 = vmatprep.subr.bf16.mxu1 %v751_v13  ;;  %689 = vmatpush3.bf16.msra.mxu0 %v762_v25  ;;  %v628_v2 = vld [vmem:[%s1032_s7] ss:$0 sm:$0xff]  ;;  %s877_s7 = scalar_lea.vmem %s596_s19, 128 }
  0x4c   :  { %690 = vmatprep.subr.bf16.mxu0 %v915_v24  ;;  %v637_v10 = vld [vmem:[%s1033_s8] ss:$0 sm:$0xff]  ;;  %p878_p11 = scmp.ne.s32.totalorder %s596_s19, %s877_s7  ;;  %p883_p13 = scmp.lt.s32.totalorder %s877_s7, %s877_s7 }
  0x4e   :  { %653 = vmatpush3.bf16.msra.mxu1 %v752_v14  ;;  %p884_p0 = por %p883_p13, %p882_p12 }
  0x4f   :  { %654 = vmatprep.subr.bf16.mxu1 %v753_v15  ;;  %691 = vmatpush3.bf16.msra.mxu0 %v763_v26 }
  0x50   :  { %692 = vmatprep.subr.bf16.mxu0 %v915_v24  ;;  %p885_p1 = pnand %p884_p0, %p878_p11 }
  0x52   :  { %655 = vmatpush3.bf16.msra.mxu1 %v754_v16 }
  0x53   :  { %656 = vmatprep.subr.bf16.mxu1 %v755_v17  ;;  %693 = vmatpush3.bf16.msra.mxu0 %v764_v27 }
  0x54   :  { %694 = vmatprep.subr.bf16.mxu0 %v915_v24 }
  0x56   :  { %657 = vmatpush3.bf16.msra.mxu1 %v756_v18 }
  0x57   :  { %658 = vmatprep.subr.bf16.mxu1 %v757_v19  ;;  %695 = vmatpush3.bf16.msra.mxu0 %v765_v28 }
  0x58   :  { %696 = vmatprep.subr.bf16.mxu0 %v915_v24 }
  0x5a   :  { %659 = vmatpush3.bf16.msra.mxu1 %v758_v20 }
  0x5b   :  { %660 = vmatprep.subr.bf16.mxu1 %v759_v21  ;;  %697 = vmatpush3.bf16.msra.mxu0 %v766_v46 }
  0x5c   :  { %698 = vmatprep.subr.bf16.mxu0 %v915_v24 }
  0x5e   :  { %661 = vmatpush3.bf16.msra.mxu1 %v760_v22 }
  0x5f   :  { %706 = vmatprep.subr.bf16.mxu1 %v915_v24  ;;  %699 = vmatpush3.bf16.msra.mxu0 %v767_v47 }
  0x60   :  { %700 = vmatprep.subr.bf16.mxu0 %v915_v24 }
  0x63   :  { %701 = vmatpush3.bf16.msra.mxu0 %v768_v48 }
 0x106   :  { %v176_v36 = vpop.f32.mrf.mxu0 }
 0x107   :  { %v177_v37 = vadd.f32 %v176_v36, %v111_v34 }
 0x108   :  { %v178_v38 = vpop.f32.mrf.mxu0 }
 0x109   :  { %v179_v39 = vadd.f32 %v178_v38, %v115_v35  ;;  %v183_v40 = vmax.f32 %v177_v37, 0.0 }
 0x10a   :  { %v180_v41 = vpop.f32.mrf.mxu0 }
 0x10b   :  { %v184_v42 = vmax.f32 %v179_v39, 0.0  ;;  %v185_v45 = vpack.c.bf16 %v183_v40, %v183_v40 }
 0x10c   :  { %v181_v43 = vpop.f32.mrf.mxu0 }
 0x10d   :  { %v186_v44 = vpack.c.bf16 %v184_v42, %v184_v42 }
 0x10f   :  { %354 = vmatprep.mubr.bf16.mxu1 %v186_v44 }
 0x110   :  { %355 = vmatmul.mubr.bf16.vlgmr.msra.gmra.mxu1 %v185_v45 }
 0x111   :  { %722 = vmatprep.mubr.msk.bf16.mxu1 %vm916_vm1, %v915_v24  ;;  %707 = vmatpush3.bf16.msra.mxu1 %v769_v49 }
 0x112   :  { %708 = vmatprep.subr.bf16.mxu1 %v915_v24 }
 0x115   :  { %709 = vmatpush3.bf16.msra.mxu1 %v770_v50 }
 0x116   :  { %710 = vmatprep.subr.bf16.mxu1 %v915_v24 }
 0x119   :  { %711 = vmatpush3.bf16.msra.mxu1 %v771_v51 }
 0x11a   :  { %712 = vmatprep.subr.bf16.mxu1 %v915_v24 }
 0x11d   :  { %713 = vmatpush3.bf16.msra.mxu1 %v772_v52 }
 0x11e   :  { %714 = vmatprep.subr.bf16.mxu1 %v915_v24 }
 0x121   :  { %715 = vmatpush3.bf16.msra.mxu1 %v773_v53 }
 0x122   :  { %716 = vmatprep.subr.bf16.mxu1 %v915_v24 }
 0x125   :  { %717 = vmatpush3.bf16.msra.mxu1 %v774_v54 }
 0x126   :  { %718 = vmatprep.subr.bf16.mxu1 %v915_v24 }
 0x129   :  { %719 = vmatpush3.bf16.msra.mxu1 %v775_v0 }
 0x12a   :  { %720 = vmatprep.subr.bf16.mxu1 %v915_v24 }
 0x12d   :  { %721 = vmatpush3.bf16.msra.mxu1 %v776_v1 }
 0x1d0   :  { %v662_v55 = vpop.f32.mrf.mxu1 }
 0x1d2   :  { %v663_v57 = vpop.f32.mrf.mxu1 }
 0x1d3   :  { %v664_v58 = vadd.f32 %v663_v57, %v662_v55 }
 0x1d4   :  { %v665_v59 = vpop.f32.mrf.mxu1 }
 0x1d5   :  { %v357_v60 = vadd.f32 %v664_v58, %v611_v56 }
 0x1d6   :  { %v666_v61 = vpop.f32.mrf.mxu1 }
 0x1d7   :  { %v362_v62 = vmax.f32 %v357_v60, 0.0 }
 0x1d9   :  { %v363_v63 = vpack.c.bf16 %v362_v62, %v362_v62 }
 0x1db   :  { %703 = vmatmul.mubr.bf16.vlgmr.msra.gmra.mxu0 %v363_v63 }
 0x29b   :  { %v469_v3 = vpop.f32.mrf.mxu0 }
 0x29c   :  { %v470_v4 = vadd.f32 %v628_v2, %v469_v3 }
 0x29d   :  { %v704_v5 = vpop.f32.mrf.mxu0 }
 0x29e   :  { %v475_v6 = vmax.f32 %v470_v4, 0.0 }
 0x29f   :  { %v472_v7 = vpop.f32.mrf.mxu0 }
 0x2a0   :  { %v476_v8 = vpack.c.bf16 %v475_v6, %v475_v6 }
 0x2a1   :  { %v705_v9 = vpop.f32.mrf.mxu0 }
 0x2a2   :  { %723 = vmatmul.mubr.bf16.vlgmr.msra.gmra.mxu1 %v476_v8 }
 0x362   :  { %v582_v11 = vpop.f32.mrf.mxu1 }
 0x363   :  { %v583_v12 = vadd.f32 %v637_v10, %v582_v11 }
 0x364   :  { %v724_v13 = vpop.f32.mrf.mxu1 }
 0x365   :  { %588 = vst [vmem:[#allocation11] sm:$0xff] %v583_v12 }
 0x366   :  { %v585_v14 = vpop.f32.mrf.mxu1 }
 0x367   :  { %888 = shalt.err (!%p885_p1)
}
 0x368   :  { %598 = dma.vmem_to_hbm [thread:$0]  %s596_s19, 128, %s1034_s9, [#allocation4]   ;;  %v725_v15 = vpop.f32.mrf.mxu1 }
 0x369   :  { %903 = dma.done.wait [#allocation4], 128  }
 0x36a   :  { %904 = vsyncadd [#allocation4], 4294967168 }
 0x36b   :  { %602 = vsyncpa [#allocation3], 1 }
 0x36c   :  { %603 = vsyncpa [#allocation6], 1 }
 0x36d   :  { %604 = vsyncpa [#allocation9], 1 }
 0x36e   :  { %605 = vsyncpa [#allocation4], 1 }

</bundles_post_ra>
